<compile_context>
chip_gen: v7x
topology: tpu7x:2x2x1
jax: 0.10.0
libtpu: 0.0.40
codegen_flags: <defaults>
</compile_context>

<pallas_src>
import functools

import numpy as np
import jax
import jax.numpy as jnp
from jax import lax
from jax.experimental import pallas as pl
from jax.experimental.pallas import tpu as pltpu


def _loss_kernel(tb, blk, p_ref, x_ref, out_ref):
    i = pl.program_id(0)

    # ---- slice the channel-major parameter slab (sublane axis) -----------
    e_logit = p_ref[0:1, :]        # (1,  blk)
    pi_raw  = p_ref[1:21, :]       # (20, blk)
    m1      = p_ref[21:41, :]
    m2      = p_ref[41:61, :]
    s1_raw  = p_ref[61:81, :]
    s2_raw  = p_ref[81:101, :]
    rho_raw = p_ref[101:121, :]

    x1 = x_ref[0:1, :]             # (1, blk), broadcasts over mixture axis
    x2 = x_ref[1:2, :]
    et = x_ref[2:3, :]

    # ---- eq. 18-23: process raw RNN outputs ------------------------------
    max_pi = jnp.max(pi_raw, axis=0, keepdims=True)           # (1, blk)
    diff = pi_raw - max_pi
    red_sum = jnp.sum(diff, axis=0, keepdims=True)            # (1, blk)
    pi = diff * pl.reciprocal(red_sum)                        # faithful: diff / sum(diff)

    inv_s1 = jnp.exp(-s1_raw)                                 # 1/s1
    inv_s2 = jnp.exp(-s2_raw)                                 # 1/s2
    rho = jnp.tanh(rho_raw)

    # ---- eq. 24, 25: bivariate normal pdf (strength-reduced) -------------
    n1 = (x1 - m1) * inv_s1
    n2 = (x2 - m2) * inv_s2
    neg_rho = 1.0 - rho * rho
    r = lax.rsqrt(neg_rho)                                    # 1/sqrt(negRho)
    inv_neg_rho = r * r                                       # 1/negRho (no extra EUP op)
    z = n1 * n1 + n2 * n2 - 2.0 * rho * n1 * n2
    exp_part = jnp.exp(-0.5 * z * inv_neg_rho)
    inv_coef = (0.5 / np.pi) * inv_s1 * inv_s2 * r
    normalpdf = exp_part * inv_coef                           # (20, blk)

    # ---- eq. 26: mixture + Bernoulli end-of-stroke term -------------------
    mix_row = jnp.sum(jnp.log1p(pi * normalpdf), axis=0, keepdims=True)  # (1, blk)
    e = 1.0 / (1.0 + jnp.exp(e_logit))                        # sigmoid(-logit)
    end_row = jnp.log1p(e * et + (1.0 - e) * (1.0 - et))      # (1, blk)
    row = mix_row + end_row                                   # (1, blk)

    # mask padded columns once on the reduced row (select -> NaNs discarded);
    # statically skipped when TB is block-aligned.
    if tb % blk != 0:
        col = i * blk + lax.broadcasted_iota(jnp.int32, (1, blk), 1)
        row = jnp.where(col < tb, row, 0.0)

    bs = jnp.sum(row, axis=1, keepdims=True)                  # (1, 1) block partial
    out_ref[0] = jnp.broadcast_to(bs, (8, 128))               # lane-dense tile store


def handwriting_loss(x, para, *, block=16384):
    """x: (seq_len, batch, 3), para: (seq_len, batch, 121) -> scalar loss."""
    if x.shape[0] != para.shape[0]:
        raise Exception("x and para don't match")
    S, B, _ = x.shape
    T = S - 1
    TB = T * B

    # ---- lane-dense slabs: one reshape/pad/transpose per input ------------
    LANE = 128
    tb_pad = pl.cdiv(TB, LANE) * LANE
    blk = min(block, tb_pad)                   # blk is a multiple of 128
    tb_pad = pl.cdiv(TB, blk) * blk
    num_blocks = tb_pad // blk
    pad = tb_pad - TB

    p_slab = para[:T].reshape(TB, 121).astype(jnp.float32)
    x_slab = x[1:].reshape(TB, 3).astype(jnp.float32)
    if pad:
        p_slab = jnp.pad(p_slab, ((0, pad), (0, 0)))
        x_slab = jnp.pad(x_slab, ((0, pad), (0, 0)))
    p_slab = p_slab.T                          # (121, tb_pad), channel-major
    x_slab = x_slab.T                          # (3,   tb_pad)

    # double-buffered f32 input blocks + slack; >= 32 MiB so blk=16384 also
    # works on v5e (16 MiB default scoped), capped well under v7x's 64 MiB.
    vmem_limit = int(min(max(2 * (121 + 3) * blk * 4 + (2 << 20), 32 << 20),
                         56 << 20))

    kernel = functools.partial(_loss_kernel, TB, blk)
    partials = pl.pallas_call(
        kernel,
        out_shape=jax.ShapeDtypeStruct((num_blocks, 8, 128), jnp.float32),
        grid_spec=pltpu.PrefetchScalarGridSpec(
            num_scalar_prefetch=0,
            grid=(num_blocks,),
            in_specs=[
                pl.BlockSpec((121, blk), lambda i: (0, i)),
                pl.BlockSpec((3, blk), lambda i: (0, i)),
            ],
            out_specs=pl.BlockSpec((1, 8, 128), lambda i: (i, 0, 0)),
        ),
        compiler_params=pltpu.CompilerParams(
            dimension_semantics=("parallel",),
            vmem_limit_bytes=vmem_limit),
    )(p_slab, x_slab)

    total = jnp.sum(partials[:, 0, 0])
    return -total / B


def reference_loss(x, para):
    """Pure-JAX replica of the PyTorch forward (intended old-torch semantics)."""
    S, B, _ = x.shape
    total = jnp.float32(0.0)
    for i in range(S - 1):
        e = 1.0 / (1.0 + jnp.exp(para[i, :, 0:1]))
        p = para[i, :, 1:]
        pi_raw, m1, m2, s1, s2, rho = [p[:, 20 * k:20 * (k + 1)] for k in range(6)]
        x1 = x[i + 1, :, 0:1]
        x2 = x[i + 1, :, 1:2]
        et = x[i + 1, :, 2:3]
        diff = pi_raw - jnp.max(pi_raw, axis=1, keepdims=True)
        pi = diff / jnp.sum(diff, axis=1, keepdims=True)
        s1 = jnp.exp(s1)
        s2 = jnp.exp(s2)
        rho = jnp.tanh(rho)
        norm1 = x1 - m1
        norm2 = x2 - m2
        s1s2 = s1 * s2
        z = (norm1 / s1) ** 2 + (norm2 / s2) ** 2 - 2.0 * rho * norm1 * norm2 / s1s2
        neg_rho = 1.0 - rho ** 2
        npdf = jnp.exp(-z / (2.0 * neg_rho)) / (2.0 * np.pi * s1s2 * jnp.sqrt(neg_rho))
        red_sum_loss = jnp.sum(jnp.log1p(pi * npdf))
        end_loss = jnp.sum(jnp.log1p(e * et + (1.0 - e) * (1.0 - et)))
        total = total + (-red_sum_loss - end_loss) / B
    return total


if __name__ == "__main__":
    key = jax.random.PRNGKey(0)
    k1, k2, k3 = jax.random.split(key, 3)

    # ---- primary small test: seq_len=8, batch=2 ---------------------------
    seq_len, batch = 8, 2
    xy = jax.random.normal(k1, (seq_len, batch, 2), dtype=jnp.float32)
    pen = jax.random.bernoulli(k2, 0.3, (seq_len, batch, 1)).astype(jnp.float32)
    x = jnp.concatenate([xy, pen], axis=-1)                 # (seq_len, batch, 3)
    para = 0.5 * jax.random.normal(k3, (seq_len, batch, 121), dtype=jnp.float32)

    loss = jax.block_until_ready(handwriting_loss(x, para))
    ref = jax.block_until_ready(reference_loss(x, para))
    assert np.isfinite(float(loss)), ("non-finite loss", loss)
    assert np.allclose(float(loss), float(ref), rtol=1e-4, atol=1e-4), (loss, ref)

    # ---- secondary test exercising multiple grid blocks + masking ---------
    k4, k5, k6 = jax.random.split(jax.random.PRNGKey(1), 3)
    seq_len2, batch2 = 40, 8                                # TB = 312 -> 3 blocks of 128
    xy2 = jax.random.normal(k4, (seq_len2, batch2, 2), dtype=jnp.float32)
    pen2 = jax.random.bernoulli(k5, 0.3, (seq_len2, batch2, 1)).astype(jnp.float32)
    x2 = jnp.concatenate([xy2, pen2], axis=-1)
    para2 = 0.5 * jax.random.normal(k6, (seq_len2, batch2, 121), dtype=jnp.float32)

    loss2 = jax.block_until_ready(handwriting_loss(x2, para2, block=128))
    ref2 = jax.block_until_ready(reference_loss(x2, para2))
    assert np.isfinite(float(loss2)), ("non-finite loss", loss2)
    assert np.allclose(float(loss2), float(ref2), rtol=1e-4, atol=1e-4), (loss2, ref2)

    print("KERNEL_OK")
</pallas_src>

<mosaic_0001>
module attributes {stable_mosaic.version = 11 : i64} {
  func.func @_loss_kernel(%arg0: i32, %arg1: memref<121x128xf32, #tpu.memory_space<vmem>>, %arg2: memref<3x128xf32, #tpu.memory_space<vmem>>, %arg3: memref<1x8x128xf32, #tpu.memory_space<vmem>>) attributes {dimension_semantics = [#tpu.dimension_semantics<parallel>], iteration_bounds = array<i64: 1>, scalar_prefetch = 0 : i64, scratch_operands = 0 : i64, tpu.core_type = #tpu.core_type<tc>, window_params = [{transform_indices = @transform_0, window_bounds = array<i64: 121, 128>}, {transform_indices = @transform_1, window_bounds = array<i64: 3, 128>}, {transform_indices = @transform_2, window_bounds = array<i64: 1, 8, 128>}]} {
    %c0 = arith.constant 0 : index
    %c0_0 = arith.constant 0 : index
    %0 = vector.load %arg1[%c0, %c0_0] : memref<121x128xf32, #tpu.memory_space<vmem>>, vector<1x128xf32>
    %c1 = arith.constant 1 : index
    %c0_1 = arith.constant 0 : index
    %1 = vector.load %arg1[%c1, %c0_1] : memref<121x128xf32, #tpu.memory_space<vmem>>, vector<20x128xf32>
    %c21 = arith.constant 21 : index
    %c0_2 = arith.constant 0 : index
    %2 = vector.load %arg1[%c21, %c0_2] : memref<121x128xf32, #tpu.memory_space<vmem>>, vector<20x128xf32>
    %c41 = arith.constant 41 : index
    %c0_3 = arith.constant 0 : index
    %3 = vector.load %arg1[%c41, %c0_3] : memref<121x128xf32, #tpu.memory_space<vmem>>, vector<20x128xf32>
    %c61 = arith.constant 61 : index
    %c0_4 = arith.constant 0 : index
    %4 = vector.load %arg1[%c61, %c0_4] : memref<121x128xf32, #tpu.memory_space<vmem>>, vector<20x128xf32>
    %c81 = arith.constant 81 : index
    %c0_5 = arith.constant 0 : index
    %5 = vector.load %arg1[%c81, %c0_5] : memref<121x128xf32, #tpu.memory_space<vmem>>, vector<20x128xf32>
    %c101 = arith.constant 101 : index
    %c0_6 = arith.constant 0 : index
    %6 = vector.load %arg1[%c101, %c0_6] : memref<121x128xf32, #tpu.memory_space<vmem>>, vector<20x128xf32>
    %c0_7 = arith.constant 0 : index
    %c0_8 = arith.constant 0 : index
    %7 = vector.load %arg2[%c0_7, %c0_8] : memref<3x128xf32, #tpu.memory_space<vmem>>, vector<1x128xf32>
    %c1_9 = arith.constant 1 : index
    %c0_10 = arith.constant 0 : index
    %8 = vector.load %arg2[%c1_9, %c0_10] : memref<3x128xf32, #tpu.memory_space<vmem>>, vector<1x128xf32>
    %c2 = arith.constant 2 : index
    %c0_11 = arith.constant 0 : index
    %9 = vector.load %arg2[%c2, %c0_11] : memref<3x128xf32, #tpu.memory_space<vmem>>, vector<1x128xf32>
    %cst = arith.constant dense<0xFF800000> : vector<128xf32>
    %10 = vector.multi_reduction <maximumf>, %1, %cst [0] : vector<20x128xf32> to vector<128xf32>
    %11 = vector.shape_cast %10 : vector<128xf32> to vector<1x128xf32>
    %12 = vector.broadcast %11 : vector<1x128xf32> to vector<20x128xf32>
    %13 = arith.subf %1, %12 : vector<20x128xf32>
    %cst_12 = arith.constant dense<0.000000e+00> : vector<128xf32>
    %14 = vector.multi_reduction <add>, %13, %cst_12 [0] : vector<20x128xf32> to vector<128xf32>
    %15 = vector.shape_cast %14 : vector<128xf32> to vector<1x128xf32>
    %16 = tpu.reciprocal %15 : vector<1x128xf32> -> vector<1x128xf32>
    %17 = vector.broadcast %16 : vector<1x128xf32> to vector<20x128xf32>
    %18 = arith.mulf %13, %17 : vector<20x128xf32>
    %cst_13 = arith.constant 0.000000e+00 : f32
    %19 = vector.broadcast %cst_13 : f32 to vector<20x128xf32>
    %20 = arith.subf %19, %4 : vector<20x128xf32>
    %21 = math.exp %20 : vector<20x128xf32>
    %cst_14 = arith.constant 0.000000e+00 : f32
    %22 = vector.broadcast %cst_14 : f32 to vector<20x128xf32>
    %23 = arith.subf %22, %5 : vector<20x128xf32>
    %24 = math.exp %23 : vector<20x128xf32>
    %25 = math.tanh %6 : vector<20x128xf32>
    %26 = vector.broadcast %7 : vector<1x128xf32> to vector<20x128xf32>
    %27 = arith.subf %26, %2 : vector<20x128xf32>
    %28 = arith.mulf %27, %21 : vector<20x128xf32>
    %29 = vector.broadcast %8 : vector<1x128xf32> to vector<20x128xf32>
    %30 = arith.subf %29, %3 : vector<20x128xf32>
    %31 = arith.mulf %30, %24 : vector<20x128xf32>
    %32 = arith.mulf %25, %25 : vector<20x128xf32>
    %cst_15 = arith.constant 1.000000e+00 : f32
    %33 = vector.broadcast %cst_15 : f32 to vector<20x128xf32>
    %34 = arith.subf %33, %32 : vector<20x128xf32>
    %35 = math.rsqrt %34 : vector<20x128xf32>
    %36 = arith.mulf %35, %35 : vector<20x128xf32>
    %37 = arith.mulf %28, %28 : vector<20x128xf32>
    %38 = arith.mulf %31, %31 : vector<20x128xf32>
    %39 = arith.addf %37, %38 : vector<20x128xf32>
    %cst_16 = arith.constant 2.000000e+00 : f32
    %40 = vector.broadcast %cst_16 : f32 to vector<20x128xf32>
    %41 = arith.mulf %40, %25 : vector<20x128xf32>
    %42 = arith.mulf %41, %28 : vector<20x128xf32>
    %43 = arith.mulf %42, %31 : vector<20x128xf32>
    %44 = arith.subf %39, %43 : vector<20x128xf32>
    %cst_17 = arith.constant -5.000000e-01 : f32
    %45 = vector.broadcast %cst_17 : f32 to vector<20x128xf32>
    %46 = arith.mulf %45, %44 : vector<20x128xf32>
    %47 = arith.mulf %46, %36 : vector<20x128xf32>
    %48 = math.exp %47 : vector<20x128xf32>
    %cst_18 = arith.constant 0.159154937 : f32
    %49 = vector.broadcast %cst_18 : f32 to vector<20x128xf32>
    %50 = arith.mulf %49, %21 : vector<20x128xf32>
    %51 = arith.mulf %50, %24 : vector<20x128xf32>
    %52 = arith.mulf %51, %35 : vector<20x128xf32>
    %53 = arith.mulf %48, %52 : vector<20x128xf32>
    %54 = arith.mulf %18, %53 : vector<20x128xf32>
    %55 = math.log1p %54 : vector<20x128xf32>
    %cst_19 = arith.constant dense<0.000000e+00> : vector<128xf32>
    %56 = vector.multi_reduction <add>, %55, %cst_19 [0] : vector<20x128xf32> to vector<128xf32>
    %57 = vector.shape_cast %56 : vector<128xf32> to vector<1x128xf32>
    %58 = math.exp %0 : vector<1x128xf32>
    %cst_20 = arith.constant 1.000000e+00 : f32
    %59 = vector.broadcast %cst_20 : f32 to vector<1x128xf32>
    %60 = arith.addf %59, %58 : vector<1x128xf32>
    %cst_21 = arith.constant 1.000000e+00 : f32
    %61 = vector.broadcast %cst_21 : f32 to vector<1x128xf32>
    %62 = arith.divf %61, %60 : vector<1x128xf32>
    %63 = arith.mulf %62, %9 : vector<1x128xf32>
    %cst_22 = arith.constant 1.000000e+00 : f32
    %64 = vector.broadcast %cst_22 : f32 to vector<1x128xf32>
    %65 = arith.subf %64, %62 : vector<1x128xf32>
    %cst_23 = arith.constant 1.000000e+00 : f32
    %66 = vector.broadcast %cst_23 : f32 to vector<1x128xf32>
    %67 = arith.subf %66, %9 : vector<1x128xf32>
    %68 = arith.mulf %65, %67 : vector<1x128xf32>
    %69 = arith.addf %63, %68 : vector<1x128xf32>
    %70 = math.log1p %69 : vector<1x128xf32>
    %71 = arith.addf %57, %70 : vector<1x128xf32>
    %c128_i32 = arith.constant 128 : i32
    %72 = arith.muli %arg0, %c128_i32 : i32
    %73 = tpu.iota {dimensions = array<i32: 1>} : vector<1x128xi32>
    %74 = vector.broadcast %72 : i32 to vector<1x128xi32>
    %75 = arith.addi %74, %73 : vector<1x128xi32>
    %c14_i32 = arith.constant 14 : i32
    %76 = vector.broadcast %c14_i32 : i32 to vector<1x128xi32>
    %77 = arith.cmpi slt, %75, %76 : vector<1x128xi32>
    %cst_24 = arith.constant 0.000000e+00 : f32
    %78 = vector.broadcast %cst_24 : f32 to vector<1x128xf32>
    %79 = arith.select %77, %71, %78 : vector<1x128xi1>, vector<1x128xf32>
    %cst_25 = arith.constant dense<0.000000e+00> : vector<1xf32>
    %80 = vector.multi_reduction <add>, %79, %cst_25 [1] : vector<1x128xf32> to vector<1xf32>
    %81 = vector.shape_cast %80 : vector<1xf32> to vector<1x1xf32>
    %82 = vector.shape_cast %81 : vector<1x1xf32> to vector<1x1xf32>
    %83 = vector.broadcast %82 : vector<1x1xf32> to vector<8x128xf32>
    %c0_26 = arith.constant 0 : index
    %c0_27 = arith.constant 0 : index
    %c0_28 = arith.constant 0 : index
    %84 = vector.load %arg3[%c0_26, %c0_27, %c0_28] : memref<1x8x128xf32, #tpu.memory_space<vmem>>, vector<1x8x128xf32>
    %85 = vector.shape_cast %84 : vector<1x8x128xf32> to vector<8x128xf32>
    %86 = vector.shape_cast %83 : vector<8x128xf32> to vector<1x8x128xf32>
    tpu.vector_store %arg3[%c0_26, %c0_27, %c0_28], %86 {strides = array<i32>} : memref<1x8x128xf32, #tpu.memory_space<vmem>>, vector<1x8x128xf32>,
    return
  }
  func.func @transform_0(%arg0: i32) -> (i32, i32) {
    %c0_i32 = arith.constant 0 : i32
    %c0_i32_0 = arith.constant 0 : i32
    return %c0_i32, %arg0 : i32, i32
  }
  func.func @transform_1(%arg0: i32) -> (i32, i32) {
    %c0_i32 = arith.constant 0 : i32
    %c0_i32_0 = arith.constant 0 : i32
    return %c0_i32, %arg0 : i32, i32
  }
  func.func @transform_2(%arg0: i32) -> (i32, i32, i32) {
    %c0_i32 = arith.constant 0 : i32
    %c0_i32_0 = arith.constant 0 : i32
    %c0_i32_1 = arith.constant 0 : i32
    return %arg0, %c0_i32, %c0_i32_0 : i32, i32, i32
  }
}

</mosaic_0001>

<bundles_post_ra>
// kernel: tpu_custom_call.1
= control target key start
LH: loop header
LB: loop body
LE: loop exit
PB: predicated region body
PF: predicated region fallthrough
CT: control target
= control target key end

     0   :  { %7 = vsyncpa [#allocation3], 0  ;;  %s481_s0 = inlined_call_operand.hbm [shape: f32[121,128], index: 0, kind: input, shape index: {}]   ;;  %s482_s1 = inlined_call_operand.hbm [shape: f32[3,128], index: 1, kind: input, shape index: {}]   ;;  %s483_s2 = inlined_call_operand.hbm [shape: f32[1,8,128], index: 2, kind: output, shape index: {}]  }
   0x1   :  { %8 = vsyncpa [#allocation6], 0 }
   0x2   :  { %9 = vsyncpa [#allocation4], 0  ;;  %s398_s9 = smov [#allocation2]   ;;  %s326_s13 = scalar_lea.hbm %s481_s0, 2048 }
   0x3   :  { %s15_s10 = sshll.u32 %s398_s9, 4  ;;  %p327_p0 = scmp.ne.s32.totalorder %s481_s0, %s326_s13  ;;  %s16_s10 = int_to_ptr.vmem [resolvable:$true] %s15_s10 }
   0x4   :  { %p330_p1 = scmp.lt.u32.totalorder %s326_s13, %s481_s0 }
   0x6   :  { %p332_p2 = pnand %p330_p1, %p327_p0 }
   0x8   :  { %335 = shalt.err (!%p332_p2)
}
   0x9   :  { %s336_s18 = scalar_lea.vmem %s16_s10, 2048  ;;  %p341_p4 = scmp.lt.s32.totalorder %s16_s10, %s16_s10 }
   0xa   :  { %p337_p3 = scmp.ne.s32.totalorder %s16_s10, %s336_s18  ;;  %p342_p5 = scmp.lt.s32.totalorder %s336_s18, %s336_s18 }
   0xc   :  { %p343_p6 = por %p342_p5, %p341_p4 }
   0xe   :  { %p344_p7 = pnand %p343_p6, %p337_p3 }
  0x10   :  { %347 = shalt.err (!%p344_p7)
}
  0x11   :  { %s399_s19 = smov 128   ;;  %s400_s20 = smov 8  }
  0x12   :  { %21 = dma.hbm_to_vmem [thread:$0]  %s481_s0, 2048, %s16_s10, [#allocation3], %s399_s19, %s399_s19, %s400_s20  }
  0x13   :  { %s401_s23 = smov [#allocation5]   ;;  %s348_s27 = scalar_lea.hbm %s482_s1, 64 }
  0x14   :  { %s28_s24 = sshll.u32 %s401_s23, 4  ;;  %p349_p8 = scmp.ne.s32.totalorder %s482_s1, %s348_s27  ;;  %s29_s24 = int_to_ptr.vmem [resolvable:$true] %s28_s24 }
  0x15   :  { %p352_p9 = scmp.lt.u32.totalorder %s348_s27, %s482_s1 }
  0x17   :  { %p354_p10 = pnand %p352_p9, %p349_p8 }
  0x19   :  { %357 = shalt.err (!%p354_p10)
}
  0x1a   :  { %s358_s4 = scalar_lea.vmem %s29_s24, 64  ;;  %p363_p12 = scmp.lt.s32.totalorder %s29_s24, %s29_s24 }
  0x1b   :  { %p359_p11 = scmp.ne.s32.totalorder %s29_s24, %s358_s4  ;;  %p364_p13 = scmp.lt.s32.totalorder %s358_s4, %s358_s4 }
  0x1d   :  { %p365_p0 = por %p364_p13, %p363_p12 }
  0x1f   :  { %p366_p1 = pnand %p365_p0, %p359_p11 }
  0x21   :  { %369 = shalt.err (!%p366_p1)
}
  0x22   :  { %31 = dma.hbm_to_vmem [thread:$0]  %s482_s1, 64, %s29_s24, [#allocation6]  }
  0x23   :  { %392 = dma.done.wait [#allocation3], 2048  }
  0x24   :  { %393 = vsyncadd [#allocation3], 4294965248 }
  0x25   :  { %394 = dma.done.wait [#allocation6], 64  }
  0x26   :  { %395 = vsyncadd [#allocation6], 4294967232  ;;  %vm60_vm0 = vcmask 1043456   ;;  %v39_v0 = vld [vmem:[#allocation2 + $0x1] sm:$0xff]  ;;  %v40_v1 = vld [vmem:[#allocation2 + $0x9] sm:$0xff]  ;;  %vm250_vm6 = vcmask 1040384  }
  0x27   :  { %v41_v2 = vld [vmem:[#allocation2 + $0x11] sm:$0xf]  ;;  %v62_v3 = vmax.f32 %v39_v0, %v40_v1  ;;  %v48_v5 = vld [vmem:[#allocation2 + $0x3d] sm:$0xff]  ;;  %v49_v6 = vld [vmem:[#allocation2 + $0x45] sm:$0xff]  ;;  %s402_s1 = smov [#allocation7]  }
  0x28   :  { %v61_v4 = vsel %vm60_vm0, %v41_v2, -inf  ;;  %v50_v8 = vld [vmem:[#allocation2 + $0x4d] sm:$0xf]  ;;  %v51_v9 = vld [vmem:[#allocation2 + $0x51] sm:$0xff]  ;;  %v52_v10 = vld [vmem:[#allocation2 + $0x59] sm:$0xff]  ;;  %v86_v11 = vsub.f32 0.0, %v48_v5 }
  0x29   :  { %v63_v7 = vmax.f32 %v62_v3, %v61_v4  ;;  %v87_v12 = vsub.f32 0.0, %v49_v6  ;;  %v53_v13 = vld [vmem:[#allocation2 + $0x61] sm:$0xf]  ;;  %v54_v14 = vld [vmem:[#allocation2 + $0x65] sm:$0xff]  ;;  %v55_v15 = vld [vmem:[#allocation2 + $0x6d] sm:$0xff]  ;;  %v88_v17 = vsub.f32 0.0, %v50_v8 }
  0x2a   :  { %282 = vtanh.f32 %v54_v14  ;;  %v89_v19 = vmul.f32 1.442695, %v86_v11  ;;  %v95_v22 = vsub.f32 0.0, %v51_v9  ;;  %v96_v23 = vsub.f32 0.0, %v52_v10  ;;  %v56_v30 = vld [vmem:[#allocation2 + $0x75] sm:$0xf] }
  0x2b   :  { %v64_v16 = vrot.slane %v63_v7, 4  ;;  %v91_v20 = vmul.f32 1.442695, %v87_v12  ;;  %284 = vtanh.f32 %v55_v15  ;;  %v93_v21 = vmul.f32 1.442695, %v88_v17  ;;  %v42_v31 = vld [vmem:[#allocation2 + $0x15] sm:$0xff] }
  0x2c   :  { %v97_v24 = vsub.f32 0.0, %v53_v13  ;;  %286 = vpow2.f32 %v89_v19  ;;  %v98_v26 = vmul.f32 1.442695, %v95_v22  ;;  %v100_v27 = vmul.f32 1.442695, %v96_v23  ;;  %v43_v32 = vld [vmem:[#allocation2 + $0x1d] sm:$0xff] }
  0x2d   :  { %v65_v18 = vmax.f32 %v63_v7, %v64_v16  ;;  %288 = vpow2.f32 %v91_v20  ;;  %v275_v33 = vld [vmem:[#allocation5] ss:$0 sm:$0xff]  ;;  %v44_v35 = vld [vmem:[#allocation2 + $0x25] sm:$0xf]  ;;  %v45_v36 = vld [vmem:[#allocation2 + $0x29] sm:$0xff]  ;;  %s265_s6 = sshll.u32 %s402_s1, 4  ;;  %s266_s6 = int_to_ptr.vmem [resolvable:$true] %s265_s6 }
  0x2e   :  { %v102_v28 = vmul.f32 1.442695, %v97_v24  ;;  %290 = vpow2.f32 %v93_v21  ;;  %v276_v37 = vld [vmem:[#allocation5 + $0x1] ss:$0 sm:$0xff]  ;;  %v111_v40 = vsub.f32 %v275_v33, %v42_v31  ;;  %v112_v41 = vsub.f32 %v275_v33, %v43_v32  ;;  %v38_v43 = vld [vmem:[#allocation2] sm:$0x1]  ;;  %p375_p3 = scmp.lt.s32.totalorder %s266_s6, %s266_s6 }
  0x2f   :  { %v66_v25 = vrot.slane %v65_v18, 2  ;;  %292 = vpow2.f32 %v98_v26  ;;  %v46_v44 = vld [vmem:[#allocation2 + $0x31] sm:$0xff]  ;;  %v47_v49 = vld [vmem:[#allocation2 + $0x39] sm:$0xf]  ;;  %v113_v50 = vsub.f32 %v275_v33, %v44_v35  ;;  %v121_v51 = vsub.f32 %v276_v37, %v45_v36  ;;  %s370_s7 = scalar_lea.vmem %s266_s6, 128 }
  0x30   :  { %294 = vpow2.f32 %v100_v27  ;;  %v122_v61 = vsub.f32 %v276_v37, %v46_v44  ;;  %v223_v63 = vmul.f32 1.442695, %v38_v43  ;;  %v123_v3 = vsub.f32 %v276_v37, %v47_v49  ;;  %p371_p2 = scmp.ne.s32.totalorder %s266_s6, %s370_s7  ;;  %p376_p4 = scmp.lt.s32.totalorder %s370_s7, %s370_s7 }
  0x31   :  { %v67_v29 = vmax.f32 %v65_v18, %v66_v25  ;;  %296 = vpow2.f32 %v102_v28 }
  0x32   :  { %298 = vtanh.f32 %v56_v30  ;;  %p377_p5 = por %p376_p4, %p375_p3 }
  0x33   :  { %v68_v34 = vrot.slane %v67_v29, 1 }
  0x34   :  { %v283_v39 = vpop.eup %282  ;;  %p378_p6 = pnand %p377_p5, %p371_p2 }
  0x35   :  { %v69_v38 = vmax.f32 %v67_v29, %v68_v34  ;;  %v285_v42 = vpop.eup %284  ;;  %v127_v48 = vmul.f32 %v283_v39, %v283_v39  ;;  %v148_v53 = vmul.f32 2.0, %v283_v39 }
  0x36   :  { %v128_v52 = vmul.f32 %v285_v42, %v285_v42  ;;  %v449_v54 = vpop.eup %286  ;;  %v149_v58 = vmul.f32 2.0, %v285_v42 }
  0x37   :  { %v443_v45 = vsub.f32 %v39_v0, %v69_v38  ;;  %v445_v46 = vsub.f32 %v40_v1, %v69_v38  ;;  %v447_v47 = vsub.f32 %v41_v2, %v69_v38  ;;  %v130_v57 = vsub.f32 1.0, %v127_v48  ;;  %v289_v59 = vpop.eup %288 }
  0x38   :  { %v114_v60 = vmul.f32 %v449_v54, %v111_v40  ;;  %v131_v62 = vsub.f32 1.0, %v128_v52  ;;  %v456_v0 = vpop.eup %290  ;;  %v115_v2 = vmul.f32 %v289_v59, %v112_v41 }
  0x39   :  { %v73_v55 = vadd.f32 %v445_v46, %v443_v45  ;;  %v74_v56 = vsel %vm60_vm0, %v447_v47, 0.0  ;;  %300 = vrsqrt.f32 %v130_v57  ;;  %v293_v4 = vpop.eup %292  ;;  %v116_v5 = vmul.f32 %v456_v0, %v113_v50 }
  0x3a   :  { %302 = vrsqrt.f32 %v131_v62  ;;  %v151_v6 = vmul.f32 %v148_v53, %v114_v60  ;;  %v295_v7 = vpop.eup %294  ;;  %v124_v9 = vmul.f32 %v293_v4, %v121_v51  ;;  %v139_v10 = vmul.f32 %v114_v60, %v114_v60 }
  0x3b   :  { %v75_v1 = vadd.f32 %v74_v56, %v73_v55  ;;  %v152_v11 = vmul.f32 %v149_v58, %v115_v2  ;;  %v459_v12 = vpop.eup %296  ;;  %v125_v13 = vmul.f32 %v295_v7, %v122_v61  ;;  %v140_v14 = vmul.f32 %v115_v2, %v115_v2 }
  0x3c   :  { %304 = vpow2.f32 %v223_v63  ;;  %v299_v15 = vpop.eup %298  ;;  %v126_v17 = vmul.f32 %v459_v12, %v123_v3  ;;  %v142_v18 = vmul.f32 %v124_v9, %v124_v9  ;;  %v154_v19 = vmul.f32 %v151_v6, %v124_v9 }
  0x3d   :  { %v76_v8 = vrot.slane %v75_v1, 4  ;;  %v129_v20 = vmul.f32 %v299_v15, %v299_v15  ;;  %v143_v21 = vmul.f32 %v125_v13, %v125_v13  ;;  %v150_v22 = vmul.f32 2.0, %v299_v15 }
  0x3e   :  { %v155_v23 = vmul.f32 %v152_v11, %v125_v13  ;;  %v141_v25 = vmul.f32 %v116_v5, %v116_v5  ;;  %v144_v26 = vmul.f32 %v126_v17, %v126_v17  ;;  %v145_v27 = vadd.f32 %v142_v18, %v139_v10 }
  0x3f   :  { %v77_v16 = vadd.f32 %v76_v8, %v75_v1  ;;  %v132_v28 = vsub.f32 1.0, %v129_v20  ;;  %v146_v29 = vadd.f32 %v143_v21, %v140_v14  ;;  %v153_v30 = vmul.f32 %v150_v22, %v116_v5 }
  0x40   :  { %v157_v32 = vsub.f32 %v145_v27, %v154_v19  ;;  %v147_v36 = vadd.f32 %v144_v26, %v141_v25  ;;  %v172_v53 = vmul.f32 0.15915494, %v449_v54  ;;  %v173_v55 = vmul.f32 0.15915494, %v289_v59 }
  0x41   :  { %v78_v24 = vrot.slane %v77_v16, 2  ;;  %306 = vrsqrt.f32 %v132_v28  ;;  %v158_v33 = vsub.f32 %v146_v29, %v155_v23  ;;  %v156_v37 = vmul.f32 %v153_v30, %v126_v17 }
  0x42   :  { %v160_v38 = vmul.f32 -0.5, %v157_v32  ;;  %v175_v61 = vmul.f32 %v293_v4, %v172_v53  ;;  %v176_v62 = vmul.f32 %v295_v7, %v173_v55  ;;  %v174_v5 = vmul.f32 0.15915494, %v456_v0 }
  0x43   :  { %v79_v31 = vadd.f32 %v78_v24, %v77_v16  ;;  %v301_v34 = vpop.eup %300  ;;  %v161_v41 = vmul.f32 -0.5, %v158_v33  ;;  %v159_v49 = vsub.f32 %v147_v36, %v156_v37  ;;  %v59_v16 = vld [vmem:[#allocation5 + $0x2] sm:$0x1] }
  0x44   :  { %v303_v39 = vpop.eup %302  ;;  %v136_v40 = vmul.f32 %v301_v34, %v301_v34  ;;  %v178_v3 = vmul.f32 %v301_v34, %v175_v61  ;;  %v177_v11 = vmul.f32 %v459_v12, %v174_v5  ;;  %v230_v20 = vsub.f32 1.0, %v59_v16 }
  0x45   :  { %v80_v35 = vrot.slane %v79_v31, 1  ;;  %v137_v43 = vmul.f32 %v303_v39, %v303_v39  ;;  %v162_v56 = vmul.f32 -0.5, %v159_v49  ;;  %v179_v6 = vmul.f32 %v303_v39, %v176_v62 }
  0x46   :  { %v305_v44 = vpop.eup %304  ;;  %v163_v48 = vmul.f32 %v160_v38, %v136_v40 }
  0x47   :  { %v81_v42 = vadd.f32 %v80_v35, %v79_v31  ;;  %v164_v50 = vmul.f32 %v161_v41, %v137_v43  ;;  %v225_v58 = vadd.f32 1.0, %v305_v44 }
  0x48   :  { %v166_v51 = vmul.f32 1.442695, %v163_v48 }
  0x49   :  { %308 = vrcp.f32 %v81_v42  ;;  %v168_v52 = vmul.f32 1.442695, %v164_v50 }
  0x4a   :  { %310 = vpow2.f32 %v166_v51 }
  0x4b   :  { %312 = vpow2.f32 %v168_v52  ;;  %v307_v57 = vpop.eup %306 }
  0x4c   :  { %v138_v60 = vmul.f32 %v307_v57, %v307_v57  ;;  %314 = vrcp.f32 %v225_v58  ;;  %v180_v17 = vmul.f32 %v307_v57, %v177_v11 }
  0x4e   :  { %v165_v63 = vmul.f32 %v162_v56, %v138_v60  ;;  %v244_v60 = vlaneseq }
  0x50   :  { %v170_v2 = vmul.f32 1.442695, %v165_v63 }
  0x52   :  { %316 = vpow2.f32 %v170_v2  ;;  %v245_v2 = vand.u32 127, %v244_v60 }
  0x53   :  { %v309_v1 = vpop.eup %308 }
  0x54   :  { %v83_v8 = vmul.f32 %v309_v1, %v443_v45  ;;  %v311_v54 = vpop.eup %310  ;;  %v84_v59 = vmul.f32 %v309_v1, %v445_v46  ;;  %v85_v0 = vmul.f32 %v309_v1, %v447_v47  ;;  %vm248_vm5 = vcmp.lt.s32.totalorder %v245_v2, 14 }
  0x55   :  { %v313_v9 = vpop.eup %312  ;;  %v181_v10 = vmul.f32 %v311_v54, %v178_v3 }
  0x56   :  { %v182_v4 = vmul.f32 %v313_v9, %v179_v6  ;;  %v315_v15 = vpop.eup %314  ;;  %v255_v9 = vshrl.u32 %v244_v60, 7 }
  0x57   :  { %v184_v7 = vmul.f32 %v181_v10, %v83_v8  ;;  %v229_v19 = vsub.f32 1.0, %v315_v15  ;;  %v228_v12 = vmul.f32 %v315_v15, %v59_v16 }
  0x58   :  { %v185_v13 = vmul.f32 %v182_v4, %v84_v59  ;;  %v256_v10 = vsub.s32 0, %v255_v9 }
  0x59   :  { %v187_v14 = vadd.f32 1.0, %v184_v7  ;;  %v190_v22 = vmul.f32 -0.5, %v184_v7  ;;  %v231_v24 = vmul.f32 %v230_v20, %v229_v19  ;;  %v193_v29 = vand.u32 2147483647, %v184_v7 }
  0x5a   :  { %v196_v18 = vadd.f32 1.0, %v185_v13  ;;  %v199_v23 = vmul.f32 -0.5, %v185_v13  ;;  %v202_v30 = vand.u32 2147483647, %v185_v13 }
  0x5b   :  { %318 = vlog2.f32 %v187_v14  ;;  %v191_v26 = vadd.f32 1.0, %v190_v22  ;;  %v232_v32 = vadd.f32 %v231_v24, %v228_v12  ;;  %vm194_vm1 = vcmp.lt.f32.partialorder %v193_v29, 0.0004427343 }
  0x5c   :  { %320 = vlog2.f32 %v196_v18  ;;  %v317_v45 = vpop.eup %316  ;;  %v200_v27 = vadd.f32 1.0, %v199_v23  ;;  %vm203_vm2 = vcmp.lt.f32.partialorder %v202_v30, 0.0004427343 }
  0x5d   :  { %v183_v46 = vmul.f32 %v317_v45, %v180_v17  ;;  %v192_v34 = vmul.f32 %v191_v26, %v184_v7  ;;  %v233_v38 = vadd.f32 1.0, %v232_v32  ;;  %v236_v51 = vmul.f32 -0.5, %v232_v32 }
  0x5e   :  { %v201_v36 = vmul.f32 %v200_v27, %v185_v13  ;;  %v239_v58 = vand.u32 2147483647, %v232_v32 }
  0x5f   :  { %v186_v21 = vmul.f32 %v183_v46, %v85_v0  ;;  %v237_v55 = vadd.f32 1.0, %v236_v51 }
  0x60   :  { %vm240_vm4 = vcmp.lt.f32.partialorder %v239_v58, 0.0004427343 }
  0x61   :  { %v205_v25 = vadd.f32 1.0, %v186_v21  ;;  %v208_v31 = vmul.f32 -0.5, %v186_v21  ;;  %v211_v39 = vand.u32 2147483647, %v186_v21  ;;  %v238_v63 = vmul.f32 %v237_v55, %v232_v32 }
  0x63   :  { %322 = vlog2.f32 %v205_v25  ;;  %v209_v37 = vadd.f32 1.0, %v208_v31  ;;  %vm212_vm3 = vcmp.lt.f32.partialorder %v211_v39, 0.0004427343 }
  0x64   :  { %324 = vlog2.f32 %v233_v38 }
  0x65   :  { %v319_v28 = vpop.eup %318  ;;  %v210_v42 = vmul.f32 %v209_v37, %v186_v21 }
  0x66   :  { %v321_v47 = vpop.eup %320  ;;  %v189_v33 = vmul.f32 0.6931472, %v319_v28 }
  0x67   :  { %v198_v35 = vmul.f32 0.6931472, %v321_v47 }
  0x68   :  { %v195_v40 = vsel %vm194_vm1, %v192_v34, %v189_v33 }
  0x69   :  { %v204_v41 = vsel %vm203_vm2, %v201_v36, %v198_v35 }
  0x6a   :  { %v214_v48 = vadd.f32 %v204_v41, %v195_v40 }
  0x6d   :  { %v323_v43 = vpop.eup %322 }
  0x6e   :  { %v207_v44 = vmul.f32 0.6931472, %v323_v43  ;;  %v325_v56 = vpop.eup %324 }
  0x6f   :  { %v235_v62 = vmul.f32 0.6931472, %v325_v56 }
  0x70   :  { %v213_v49 = vsel %vm212_vm3, %v210_v42, %v207_v44 }
  0x71   :  { %v215_v50 = vsel %vm60_vm0, %v213_v49, 0.0  ;;  %v241_v5 = vsel %vm240_vm4, %v238_v63, %v235_v62 }
  0x72   :  { %v216_v52 = vadd.f32 %v215_v50, %v214_v48 }
  0x74   :  { %v217_v53 = vrot.slane %v216_v52, 4 }
  0x76   :  { %v218_v57 = vadd.f32 %v217_v53, %v216_v52 }
  0x78   :  { %v219_v61 = vrot.slane %v218_v57, 2 }
  0x7a   :  { %v220_v1 = vadd.f32 %v219_v61, %v218_v57 }
  0x7c   :  { %v221_v3 = vrot.slane %v220_v1, 1 }
  0x7e   :  { %v222_v6 = vadd.f32 %v221_v3, %v220_v1 }
  0x80   :  { %v242_v8 = vadd.f32 %v241_v5, %v222_v6 }
  0x82   :  { %v249_v54 = vsel %vm248_vm5, %v242_v8, 0.0 }
  0x83   :  { %v251_v59 = vsel %vm250_vm6, %v249_v54, 0.0 }
  0x84   :  { %252 = vadd.xlane.f32.xlu0 %v251_v59 }
 0x111   :  { %v253_v11 = vpop.xlane.xlu0 %252 }
 0x112   :  { %v257_v4 = vrot.slane %v253_v11, %v256_v10 }
 0x114   :  { %258 = vst [vmem:[#allocation7] sm:$0xff] %v257_v4 }
 0x115   :  { %381 = shalt.err (!%p378_p6)
}
 0x116   :  { %s382_s10 = scalar_lea.hbm %s483_s2, 128 }
 0x117   :  { %p383_p7 = scmp.ne.s32.totalorder %s483_s2, %s382_s10  ;;  %p386_p8 = scmp.lt.u32.totalorder %s382_s10, %s483_s2 }
 0x119   :  { %p388_p9 = pnand %p386_p8, %p383_p7 }
 0x11b   :  { %391 = shalt.err (!%p388_p9)
}
 0x11c   :  { %268 = dma.vmem_to_hbm [thread:$0]  %s266_s6, 128, %s483_s2, [#allocation4]  }
 0x11d   :  { %396 = dma.done.wait [#allocation4], 128  }
 0x11e   :  { %397 = vsyncadd [#allocation4], 4294967168 }
 0x11f   :  { %272 = vsyncpa [#allocation3], 1 }
 0x120   :  { %273 = vsyncpa [#allocation6], 1 }
 0x121   :  { %274 = vsyncpa [#allocation4], 1 }

</bundles_post_ra>
